<compile_context>
chip_gen: v5e
topology: v5e:2x2
jax: 0.10.0
libtpu: 0.0.40
codegen_flags: <defaults>
</compile_context>

<pallas_src>
import jax
import jax.numpy as jnp
from jax.experimental import pallas as pl
from jax.experimental.pallas import tpu as pltpu

_SUBLANE = 8  # f32 sublane tile


def _make_rnn_kernel(num_layers, seq_len, batch, hidden):
    """Builds the Pallas kernel body: wavefront stacked tanh-RNN + Linear head."""

    def kernel(*refs):
        # Refs: x_flat, w_ih0_t, w_hh0_t, b0, [w_cat_l, b_l]*(L-1), w_fc_t, b_fc, out
        x_ref = refs[0]
        w_ih0_ref, w_hh0_ref, b0_ref = refs[1], refs[2], refs[3]
        idx = 4
        upper = []
        for _ in range(num_layers - 1):
            upper.append((refs[idx], refs[idx + 1]))
            idx += 2
        w_fc_t_ref = refs[idx]
        b_fc_ref = refs[idx + 1]
        out_ref = refs[idx + 2]

        # Hoisted layer-0 input projection + fused bias: ONE (T*Bp, I) @ (I, H)
        # matmul; none of it sits on the serial h-chain.
        pre0 = (jnp.dot(x_ref[...], w_ih0_ref[...],
                        preferred_element_type=jnp.float32) + b0_ref[...])

        # Loop-invariant weight loads (resident for the whole recurrence).
        w_hh0 = w_hh0_ref[...]                           # (H, H)
        w_cat = [w_ref[...] for (w_ref, _) in upper]     # (2H, H) per upper layer
        b_up = [b_ref[...] for (_, b_ref) in upper]      # (1, H)

        # h[l]: most recent hidden state of layer l, kept purely as values
        # (vregs) -- no inter-layer VMEM scratch, no masked sub-tile stores.
        h = [None] * num_layers

        # Wavefront over anti-diagonals d = t + l. Everything computed on
        # diagonal d only reads diagonal d-1, so the serial dependency chain
        # is T + L - 1 steps and each diagonal's MXU pushes are independent.
        for d in range(seq_len + num_layers - 1):
            h_next = list(h)
            for l in range(num_layers):
                t = d - l
                if t < 0 or t >= seq_len:
                    continue
                if l == 0:
                    p = pre0[t * batch:(t + 1) * batch, :]      # 8-row aligned
                    if t == 0:
                        # h starts at zero: no recurrence matmul at all.
                        h_next[0] = jnp.tanh(p)
                    else:
                        h_next[0] = jnp.tanh(
                            p + jnp.dot(h[0], w_hh0,
                                        preferred_element_type=jnp.float32))
                else:
                    wc, b = w_cat[l - 1], b_up[l - 1]
                    if t == 0:
                        # h_{l,-1} == 0: only the W_ih half of the stacked weight.
                        h_next[l] = jnp.tanh(
                            jnp.dot(h[l - 1], wc[:hidden, :],
                                    preferred_element_type=jnp.float32) + b)
                    else:
                        # Input projection + recurrence folded into ONE MXU pass:
                        # [h_{l-1,t}, h_{l,t-1}] @ [[W_ih_t]; [W_hh_t]], 2H <= 128.
                        xin = jnp.concatenate([h[l - 1], h[l]], axis=-1)
                        h_next[l] = jnp.tanh(
                            jnp.dot(xin, wc,
                                    preferred_element_type=jnp.float32) + b)
            h = h_next

        # Final Linear on the last layer's final hidden state.
        y = (jnp.dot(h[num_layers - 1], w_fc_t_ref[...],
                     preferred_element_type=jnp.float32) + b_fc_ref[...])
        out_ref[...] = y.astype(out_ref.dtype)

    return kernel


def pack_params(params):
    """One-time conversion to kernel layout (outside the hot path):
    transposed weights, fused b_ih+b_hh, and stacked [W_ih_t; W_hh_t] for
    layers >= 1 (so the in-kernel recurrence is a single MXU pass)."""
    num_layers = len(params["w_ih"])
    packed = [
        jnp.transpose(params["w_ih"][0]),                       # (I, H)
        jnp.transpose(params["w_hh"][0]),                       # (H, H)
        (params["b_ih"][0] + params["b_hh"][0])[None, :],       # (1, H)
    ]
    for l in range(1, num_layers):
        w_cat = jnp.concatenate(
            [jnp.transpose(params["w_ih"][l]),
             jnp.transpose(params["w_hh"][l])], axis=0)         # (2H, H)
        packed.append(w_cat)
        packed.append((params["b_ih"][l] + params["b_hh"][l])[None, :])
    packed.append(jnp.transpose(params["w_fc"]))                # (H, O)
    packed.append(params["b_fc"][None, :])                      # (1, O)
    return packed


def rnn_weather_predictor(x, packed_params):
    """x: (B, T, input_size) float32. packed_params: output of pack_params()."""
    B, T, I = x.shape
    L = (len(packed_params) - 3) // 2
    H = packed_params[1].shape[0]          # w_hh0_t is (H, H)
    O = packed_params[-2].shape[1]         # w_fc_t is (H, O)

    # Pad batch to the f32 sublane tile so every per-timestep slice in the
    # kernel starts on an (8, 128) tile boundary; padded rows are discarded.
    Bp = ((B + _SUBLANE - 1) // _SUBLANE) * _SUBLANE
    x_pad = jnp.zeros((Bp, T, I), x.dtype).at[:B].set(x)
    # Time-major + flattened so the kernel only handles 2-D operands.
    x_flat = jnp.transpose(x_pad, (1, 0, 2)).reshape(T * Bp, I)

    kernel = _make_rnn_kernel(L, T, Bp, H)
    vmem = pl.BlockSpec(memory_space=pltpu.MemorySpace.VMEM)
    inputs = [x_flat] + list(packed_params)

    y_pad = pl.pallas_call(
        kernel,
        out_shape=jax.ShapeDtypeStruct((Bp, O), jnp.float32),
        in_specs=[vmem] * len(inputs),
        out_specs=vmem,
    )(*inputs)
    return y_pad[:B]


def init_params(key, input_size, hidden_size, output_size, num_layers):
    """Deterministic PyTorch-default-style init: U(-1/sqrt(H), 1/sqrt(H))."""
    bound = 1.0 / jnp.sqrt(jnp.float32(hidden_size))
    params = {"w_ih": [], "w_hh": [], "b_ih": [], "b_hh": []}
    for l in range(num_layers):
        in_dim = input_size if l == 0 else hidden_size
        key, k1, k2, k3, k4 = jax.random.split(key, 5)
        params["w_ih"].append(
            jax.random.uniform(k1, (hidden_size, in_dim), jnp.float32, -bound, bound))
        params["w_hh"].append(
            jax.random.uniform(k2, (hidden_size, hidden_size), jnp.float32, -bound, bound))
        params["b_ih"].append(
            jax.random.uniform(k3, (hidden_size,), jnp.float32, -bound, bound))
        params["b_hh"].append(
            jax.random.uniform(k4, (hidden_size,), jnp.float32, -bound, bound))
    key, k5, k6 = jax.random.split(key, 3)
    params["w_fc"] = jax.random.uniform(
        k5, (output_size, hidden_size), jnp.float32, -bound, bound)
    params["b_fc"] = jax.random.uniform(
        k6, (output_size,), jnp.float32, -bound, bound)
    return params


def reference_forward(x, params):
    """Pure-JAX reference of the PyTorch forward, for validation."""
    B, T, _ = x.shape
    H = params["w_hh"][0].shape[0]
    L = len(params["w_ih"])
    seq = x
    for l in range(L):
        w_ih, w_hh = params["w_ih"][l], params["w_hh"][l]
        b = params["b_ih"][l] + params["b_hh"][l]
        h = jnp.zeros((B, H), jnp.float32)
        outs = []
        for t in range(T):
            h = jnp.tanh(seq[:, t, :] @ w_ih.T + h @ w_hh.T + b)
            outs.append(h)
        seq = jnp.stack(outs, axis=1)
    return seq[:, -1, :] @ params["w_fc"].T + params["b_fc"]


if __name__ == "__main__":
    # Small shapes consistent with the module's forward:
    # batch=2, seq=8, input_size=4, hidden=32, output=1, num_layers=2.
    B, T, I, H, O, L = 2, 8, 4, 32, 1, 2

    key = jax.random.PRNGKey(0)
    key, kx = jax.random.split(key)
    x = jax.random.normal(kx, (B, T, I), jnp.float32)
    params = init_params(key, I, H, O, L)
    packed = pack_params(params)          # one-time layout conversion

    y = rnn_weather_predictor(x, packed)
    jax.block_until_ready(y)

    y_ref = reference_forward(x, params)
    assert y.shape == (B, O)
    assert jnp.allclose(y, y_ref, atol=1e-5, rtol=1e-5), "mismatch vs reference"

    print("KERNEL_OK")
</pallas_src>

<mosaic_0001>
module attributes {stable_mosaic.version = 11 : i64} {
  func.func @kernel(%arg0: memref<64x4xf32, #tpu.memory_space<vmem>>, %arg1: memref<4x32xf32, #tpu.memory_space<vmem>>, %arg2: memref<32x32xf32, #tpu.memory_space<vmem>>, %arg3: memref<1x32xf32, #tpu.memory_space<vmem>>, %arg4: memref<64x32xf32, #tpu.memory_space<vmem>>, %arg5: memref<1x32xf32, #tpu.memory_space<vmem>>, %arg6: memref<32x1xf32, #tpu.memory_space<vmem>>, %arg7: memref<1x1xf32, #tpu.memory_space<vmem>>, %arg8: memref<8x1xf32, #tpu.memory_space<vmem>>) attributes {dimension_semantics = [], scalar_prefetch = 0 : i64, scratch_operands = 0 : i64, tpu.core_type = #tpu.core_type<tc>} {
    %c0 = arith.constant 0 : index
    %c0_0 = arith.constant 0 : index
    %0 = vector.load %arg0[%c0, %c0_0] : memref<64x4xf32, #tpu.memory_space<vmem>>, vector<64x4xf32>
    %c0_1 = arith.constant 0 : index
    %c0_2 = arith.constant 0 : index
    %1 = vector.load %arg1[%c0_1, %c0_2] : memref<4x32xf32, #tpu.memory_space<vmem>>, vector<4x32xf32>
    %cst = arith.constant dense<0.000000e+00> : vector<64x32xf32>
    %2 = tpu.matmul %0, %1, %cst {dimension_numbers = #tpu.dot_dimension_numbers<[1], [0], [0], [1], [0, 0, 1, 1], [], []>} : vector<64x4xf32>, vector<4x32xf32>, vector<64x32xf32> -> vector<64x32xf32>
    %c0_3 = arith.constant 0 : index
    %c0_4 = arith.constant 0 : index
    %3 = vector.load %arg3[%c0_3, %c0_4] : memref<1x32xf32, #tpu.memory_space<vmem>>, vector<1x32xf32>
    %4 = vector.broadcast %3 : vector<1x32xf32> to vector<64x32xf32>
    %5 = arith.addf %2, %4 : vector<64x32xf32>
    %c0_5 = arith.constant 0 : index
    %c0_6 = arith.constant 0 : index
    %6 = vector.load %arg2[%c0_5, %c0_6] : memref<32x32xf32, #tpu.memory_space<vmem>>, vector<32x32xf32>
    %c0_7 = arith.constant 0 : index
    %c0_8 = arith.constant 0 : index
    %7 = vector.load %arg4[%c0_7, %c0_8] : memref<64x32xf32, #tpu.memory_space<vmem>>, vector<64x32xf32>
    %c0_9 = arith.constant 0 : index
    %c0_10 = arith.constant 0 : index
    %8 = vector.load %arg5[%c0_9, %c0_10] : memref<1x32xf32, #tpu.memory_space<vmem>>, vector<1x32xf32>
    %9 = vector.extract_strided_slice %5 {offsets = [0, 0], sizes = [8, 32], strides = [1, 1]} : vector<64x32xf32> to vector<8x32xf32>
    %10 = math.tanh %9 : vector<8x32xf32>
    %11 = vector.extract_strided_slice %5 {offsets = [8, 0], sizes = [8, 32], strides = [1, 1]} : vector<64x32xf32> to vector<8x32xf32>
    %cst_11 = arith.constant dense<0.000000e+00> : vector<8x32xf32>
    %12 = tpu.matmul %10, %6, %cst_11 {dimension_numbers = #tpu.dot_dimension_numbers<[1], [0], [0], [1], [0, 0, 1, 1], [], []>} : vector<8x32xf32>, vector<32x32xf32>, vector<8x32xf32> -> vector<8x32xf32>
    %13 = arith.addf %11, %12 : vector<8x32xf32>
    %14 = math.tanh %13 : vector<8x32xf32>
    %15 = vector.extract_strided_slice %7 {offsets = [0, 0], sizes = [32, 32], strides = [1, 1]} : vector<64x32xf32> to vector<32x32xf32>
    %cst_12 = arith.constant dense<0.000000e+00> : vector<8x32xf32>
    %16 = tpu.matmul %10, %15, %cst_12 {dimension_numbers = #tpu.dot_dimension_numbers<[1], [0], [0], [1], [0, 0, 1, 1], [], []>} : vector<8x32xf32>, vector<32x32xf32>, vector<8x32xf32> -> vector<8x32xf32>
    %17 = vector.broadcast %8 : vector<1x32xf32> to vector<8x32xf32>
    %18 = arith.addf %16, %17 : vector<8x32xf32>
    %19 = math.tanh %18 : vector<8x32xf32>
    %20 = vector.extract_strided_slice %5 {offsets = [16, 0], sizes = [8, 32], strides = [1, 1]} : vector<64x32xf32> to vector<8x32xf32>
    %cst_13 = arith.constant dense<0.000000e+00> : vector<8x32xf32>
    %21 = tpu.matmul %14, %6, %cst_13 {dimension_numbers = #tpu.dot_dimension_numbers<[1], [0], [0], [1], [0, 0, 1, 1], [], []>} : vector<8x32xf32>, vector<32x32xf32>, vector<8x32xf32> -> vector<8x32xf32>
    %22 = arith.addf %20, %21 : vector<8x32xf32>
    %23 = math.tanh %22 : vector<8x32xf32>
    %24 = tpu.concatenate %14, %19 in 1 : vector<8x32xf32>, vector<8x32xf32> -> vector<8x64xf32>
    %cst_14 = arith.constant dense<0.000000e+00> : vector<8x32xf32>
    %25 = tpu.matmul %24, %7, %cst_14 {dimension_numbers = #tpu.dot_dimension_numbers<[1], [0], [0], [1], [0, 0, 1, 1], [], []>} : vector<8x64xf32>, vector<64x32xf32>, vector<8x32xf32> -> vector<8x32xf32>
    %26 = vector.broadcast %8 : vector<1x32xf32> to vector<8x32xf32>
    %27 = arith.addf %25, %26 : vector<8x32xf32>
    %28 = math.tanh %27 : vector<8x32xf32>
    %29 = vector.extract_strided_slice %5 {offsets = [24, 0], sizes = [8, 32], strides = [1, 1]} : vector<64x32xf32> to vector<8x32xf32>
    %cst_15 = arith.constant dense<0.000000e+00> : vector<8x32xf32>
    %30 = tpu.matmul %23, %6, %cst_15 {dimension_numbers = #tpu.dot_dimension_numbers<[1], [0], [0], [1], [0, 0, 1, 1], [], []>} : vector<8x32xf32>, vector<32x32xf32>, vector<8x32xf32> -> vector<8x32xf32>
    %31 = arith.addf %29, %30 : vector<8x32xf32>
    %32 = math.tanh %31 : vector<8x32xf32>
    %33 = tpu.concatenate %23, %28 in 1 : vector<8x32xf32>, vector<8x32xf32> -> vector<8x64xf32>
    %cst_16 = arith.constant dense<0.000000e+00> : vector<8x32xf32>
    %34 = tpu.matmul %33, %7, %cst_16 {dimension_numbers = #tpu.dot_dimension_numbers<[1], [0], [0], [1], [0, 0, 1, 1], [], []>} : vector<8x64xf32>, vector<64x32xf32>, vector<8x32xf32> -> vector<8x32xf32>
    %35 = vector.broadcast %8 : vector<1x32xf32> to vector<8x32xf32>
    %36 = arith.addf %34, %35 : vector<8x32xf32>
    %37 = math.tanh %36 : vector<8x32xf32>
    %38 = vector.extract_strided_slice %5 {offsets = [32, 0], sizes = [8, 32], strides = [1, 1]} : vector<64x32xf32> to vector<8x32xf32>
    %cst_17 = arith.constant dense<0.000000e+00> : vector<8x32xf32>
    %39 = tpu.matmul %32, %6, %cst_17 {dimension_numbers = #tpu.dot_dimension_numbers<[1], [0], [0], [1], [0, 0, 1, 1], [], []>} : vector<8x32xf32>, vector<32x32xf32>, vector<8x32xf32> -> vector<8x32xf32>
    %40 = arith.addf %38, %39 : vector<8x32xf32>
    %41 = math.tanh %40 : vector<8x32xf32>
    %42 = tpu.concatenate %32, %37 in 1 : vector<8x32xf32>, vector<8x32xf32> -> vector<8x64xf32>
    %cst_18 = arith.constant dense<0.000000e+00> : vector<8x32xf32>
    %43 = tpu.matmul %42, %7, %cst_18 {dimension_numbers = #tpu.dot_dimension_numbers<[1], [0], [0], [1], [0, 0, 1, 1], [], []>} : vector<8x64xf32>, vector<64x32xf32>, vector<8x32xf32> -> vector<8x32xf32>
    %44 = vector.broadcast %8 : vector<1x32xf32> to vector<8x32xf32>
    %45 = arith.addf %43, %44 : vector<8x32xf32>
    %46 = math.tanh %45 : vector<8x32xf32>
    %47 = vector.extract_strided_slice %5 {offsets = [40, 0], sizes = [8, 32], strides = [1, 1]} : vector<64x32xf32> to vector<8x32xf32>
    %cst_19 = arith.constant dense<0.000000e+00> : vector<8x32xf32>
    %48 = tpu.matmul %41, %6, %cst_19 {dimension_numbers = #tpu.dot_dimension_numbers<[1], [0], [0], [1], [0, 0, 1, 1], [], []>} : vector<8x32xf32>, vector<32x32xf32>, vector<8x32xf32> -> vector<8x32xf32>
    %49 = arith.addf %47, %48 : vector<8x32xf32>
    %50 = math.tanh %49 : vector<8x32xf32>
    %51 = tpu.concatenate %41, %46 in 1 : vector<8x32xf32>, vector<8x32xf32> -> vector<8x64xf32>
    %cst_20 = arith.constant dense<0.000000e+00> : vector<8x32xf32>
    %52 = tpu.matmul %51, %7, %cst_20 {dimension_numbers = #tpu.dot_dimension_numbers<[1], [0], [0], [1], [0, 0, 1, 1], [], []>} : vector<8x64xf32>, vector<64x32xf32>, vector<8x32xf32> -> vector<8x32xf32>
    %53 = vector.broadcast %8 : vector<1x32xf32> to vector<8x32xf32>
    %54 = arith.addf %52, %53 : vector<8x32xf32>
    %55 = math.tanh %54 : vector<8x32xf32>
    %56 = vector.extract_strided_slice %5 {offsets = [48, 0], sizes = [8, 32], strides = [1, 1]} : vector<64x32xf32> to vector<8x32xf32>
    %cst_21 = arith.constant dense<0.000000e+00> : vector<8x32xf32>
    %57 = tpu.matmul %50, %6, %cst_21 {dimension_numbers = #tpu.dot_dimension_numbers<[1], [0], [0], [1], [0, 0, 1, 1], [], []>} : vector<8x32xf32>, vector<32x32xf32>, vector<8x32xf32> -> vector<8x32xf32>
    %58 = arith.addf %56, %57 : vector<8x32xf32>
    %59 = math.tanh %58 : vector<8x32xf32>
    %60 = tpu.concatenate %50, %55 in 1 : vector<8x32xf32>, vector<8x32xf32> -> vector<8x64xf32>
    %cst_22 = arith.constant dense<0.000000e+00> : vector<8x32xf32>
    %61 = tpu.matmul %60, %7, %cst_22 {dimension_numbers = #tpu.dot_dimension_numbers<[1], [0], [0], [1], [0, 0, 1, 1], [], []>} : vector<8x64xf32>, vector<64x32xf32>, vector<8x32xf32> -> vector<8x32xf32>
    %62 = vector.broadcast %8 : vector<1x32xf32> to vector<8x32xf32>
    %63 = arith.addf %61, %62 : vector<8x32xf32>
    %64 = math.tanh %63 : vector<8x32xf32>
    %65 = vector.extract_strided_slice %5 {offsets = [56, 0], sizes = [8, 32], strides = [1, 1]} : vector<64x32xf32> to vector<8x32xf32>
    %cst_23 = arith.constant dense<0.000000e+00> : vector<8x32xf32>
    %66 = tpu.matmul %59, %6, %cst_23 {dimension_numbers = #tpu.dot_dimension_numbers<[1], [0], [0], [1], [0, 0, 1, 1], [], []>} : vector<8x32xf32>, vector<32x32xf32>, vector<8x32xf32> -> vector<8x32xf32>
    %67 = arith.addf %65, %66 : vector<8x32xf32>
    %68 = math.tanh %67 : vector<8x32xf32>
    %69 = tpu.concatenate %59, %64 in 1 : vector<8x32xf32>, vector<8x32xf32> -> vector<8x64xf32>
    %cst_24 = arith.constant dense<0.000000e+00> : vector<8x32xf32>
    %70 = tpu.matmul %69, %7, %cst_24 {dimension_numbers = #tpu.dot_dimension_numbers<[1], [0], [0], [1], [0, 0, 1, 1], [], []>} : vector<8x64xf32>, vector<64x32xf32>, vector<8x32xf32> -> vector<8x32xf32>
    %71 = vector.broadcast %8 : vector<1x32xf32> to vector<8x32xf32>
    %72 = arith.addf %70, %71 : vector<8x32xf32>
    %73 = math.tanh %72 : vector<8x32xf32>
    %74 = tpu.concatenate %68, %73 in 1 : vector<8x32xf32>, vector<8x32xf32> -> vector<8x64xf32>
    %cst_25 = arith.constant dense<0.000000e+00> : vector<8x32xf32>
    %75 = tpu.matmul %74, %7, %cst_25 {dimension_numbers = #tpu.dot_dimension_numbers<[1], [0], [0], [1], [0, 0, 1, 1], [], []>} : vector<8x64xf32>, vector<64x32xf32>, vector<8x32xf32> -> vector<8x32xf32>
    %76 = vector.broadcast %8 : vector<1x32xf32> to vector<8x32xf32>
    %77 = arith.addf %75, %76 : vector<8x32xf32>
    %78 = math.tanh %77 : vector<8x32xf32>
    %c0_26 = arith.constant 0 : index
    %c0_27 = arith.constant 0 : index
    %79 = vector.load %arg6[%c0_26, %c0_27] : memref<32x1xf32, #tpu.memory_space<vmem>>, vector<32x1xf32>
    %cst_28 = arith.constant dense<0.000000e+00> : vector<8x1xf32>
    %80 = tpu.matmul %78, %79, %cst_28 {dimension_numbers = #tpu.dot_dimension_numbers<[1], [0], [0], [1], [0, 0, 1, 1], [], []>} : vector<8x32xf32>, vector<32x1xf32>, vector<8x1xf32> -> vector<8x1xf32>
    %c0_29 = arith.constant 0 : index
    %c0_30 = arith.constant 0 : index
    %81 = vector.load %arg7[%c0_29, %c0_30] : memref<1x1xf32, #tpu.memory_space<vmem>>, vector<1x1xf32>
    %82 = vector.broadcast %81 : vector<1x1xf32> to vector<8x1xf32>
    %83 = arith.addf %80, %82 : vector<8x1xf32>
    %c0_31 = arith.constant 0 : index
    %c0_32 = arith.constant 0 : index
    %84 = vector.load %arg8[%c0_31, %c0_32] : memref<8x1xf32, #tpu.memory_space<vmem>>, vector<8x1xf32>
    tpu.vector_store %arg8[%c0_31, %c0_32], %83 {strides = array<i32>} : memref<8x1xf32, #tpu.memory_space<vmem>>, vector<8x1xf32>,
    return
  }
}

</mosaic_0001>

<bundles_post_ra>
// kernel: tpu_custom_call.1
= control target key start
LH: loop header
LB: loop body
LE: loop exit
PB: predicated region body
PF: predicated region fallthrough
CT: control target
= control target key end

     0   :  { %vm69_vm0 = vcmask 1043456   ;;  %vm44_vm1 = vcmask 31744   ;;  %vm128_vm2 = vcmask 261120   ;;  %vm208_vm3 = vcmask 523264   ;;  %s933_s1 = inlined_call_operand.vmem [shape: f32[4,32], index: 1, kind: input, shape index: {}]   ;;  %s934_s0 = inlined_call_operand.vmem [shape: f32[64,4], index: 0, kind: input, shape index: {}]   ;;  %s935_s3 = inlined_call_operand.vmem [shape: f32[1,32], index: 3, kind: input, shape index: {}]   ;;  %s936_s2 = inlined_call_operand.vmem [shape: f32[32,32], index: 2, kind: input, shape index: {}]   ;;  %s937_s4 = inlined_call_operand.vmem [shape: f32[64,32], index: 4, kind: input, shape index: {}]   ;;  %s938_s5 = inlined_call_operand.vmem [shape: f32[1,32], index: 5, kind: input, shape index: {}]   ;;  %s939_s6 = inlined_call_operand.vmem [shape: f32[32,1], index: 6, kind: input, shape index: {}]   ;;  %s940_s7 = inlined_call_operand.<no memory space> [shape: f32[1,1], index: 7, kind: input, shape index: {}]   ;;  %s941_s8 = inlined_call_operand.vmem [shape: f32[8,1], index: 8, kind: output, shape index: {}]  }
   0x1   :  { %v39_v0 = vld [vmem:[%s933_s1] sm:$0xf]  ;;  %v686_v2 = vld [vmem:[%s936_s2 + $0x18] sm:$0xff]  ;;  %v698_v4 = vld [vmem:[%s936_s2 + $0x10] sm:$0xff]  ;;  %vm563_vm4 = vcmask 7168  }
   0x2   :  { %v31_v1 = vld [vmem:[%s934_s0] sm:$0xff]  ;;  %569 = vmatpush.msk.msra.mxu0 %vm69_vm0, %v39_v0  ;;  %v691_v3 = vld [vmem:[%s937_s4 + $0x18] sm:$0xff]  ;;  %144 = vmatpush.msra.mxu1 %v686_v2  ;;  %v703_v5 = vld [vmem:[%s937_s4 + $0x10] sm:$0xff] }
   0x3   :  { %570 = vmatmul.msk.f32.vlgmr.msra.gmra.mxu0 %vm44_vm1, %v31_v1  ;;  %169 = vmatpush.msra.mxu2 %v691_v3  ;;  %v708_v6 = vld [vmem:[%s936_s2 + $0x8] sm:$0xff]  ;;  %v725_v9 = vld [vmem:[%s936_s2] sm:$0xff]  ;;  %v33_v15 = vld [vmem:[%s934_s0 + $0x10] sm:$0xff] }
   0x4   :  { %v713_v7 = vld [vmem:[%s937_s4 + $0x8] sm:$0xff]  ;;  %193 = vmatpush.msra.mxu3 %v686_v2  ;;  %145 = vmatpush.msra.mxu1 %v698_v4  ;;  %v730_v10 = vld [vmem:[%s937_s4] sm:$0xff]  ;;  %v762_v16 = vld [vmem:[%s937_s4 + $0x38] sm:$0xff] }
   0x5   :  { %v32_v8 = vld [vmem:[%s934_s0 + $0x8] sm:$0xff]  ;;  %170 = vmatpush.msra.mxu2 %v703_v5  ;;  %v746_v11 = vld [vmem:[%s935_s3] ss:$0 sm:$0xff]  ;;  %v767_v17 = vld [vmem:[%s937_s4 + $0x30] sm:$0xff] }
   0x6   :  { %194 = vmatpush.msra.mxu3 %v698_v4  ;;  %146 = vmatpush.msra.mxu1 %v708_v6  ;;  %v774_v18 = vld [vmem:[%s937_s4 + $0x28] sm:$0xff]  ;;  %v781_v19 = vld [vmem:[%s937_s4 + $0x20] sm:$0xff]  ;;  %v34_v29 = vld [vmem:[%s934_s0 + $0x18] sm:$0xff] }
   0x7   :  { %171 = vmatpush.msra.mxu2 %v713_v7  ;;  %v801_v24 = vld [vmem:[%s938_s5] ss:$0 sm:$0xff]  ;;  %s630_s5 = smov 32   ;;  %v36_v48 = vld [vmem:[%s934_s0 + $0x28] sm:$0xff]  ;;  %v37_v57 = vld [vmem:[%s934_s0 + $0x30] sm:$0xff] }
   0x8   :  { %195 = vmatpush.msra.mxu3 %v708_v6  ;;  %147 = vmatpush.msra.mxu1 %v725_v9  ;;  %v35_v39 = vld [vmem:[%s934_s0 + $0x20] sm:$0xff]  ;;  %v38_v1 = vld [vmem:[%s934_s0 + $0x38] sm:$0xff] }
   0x9   :  { %172 = vmatpush.msra.mxu2 %v730_v10 }
   0xa   :  { %196 = vmatpush.msra.mxu3 %v725_v9  ;;  %220 = vmatpush.msrb.mxu1 %v762_v16 }
   0xb   :  { %571 = vmatmul.msk.f32.gmra.mxu0 %vm44_vm1, %v32_v8  ;;  %248 = vmatpush.msrb.mxu2 %v686_v2 }
   0xc   :  { %274 = vmatpush.msrb.mxu3 %v762_v16  ;;  %221 = vmatpush.msrb.mxu1 %v767_v17 }
   0xd   :  { %249 = vmatpush.msrb.mxu2 %v698_v4 }
   0xe   :  { %275 = vmatpush.msrb.mxu3 %v767_v17  ;;  %222 = vmatpush.msrb.mxu1 %v774_v18 }
   0xf   :  { %250 = vmatpush.msrb.mxu2 %v708_v6 }
  0x10   :  { %276 = vmatpush.msrb.mxu3 %v774_v18  ;;  %223 = vmatpush.msrb.mxu1 %v781_v19 }
  0x11   :  { %251 = vmatpush.msrb.mxu2 %v725_v9 }
  0x12   :  { %277 = vmatpush.msrb.mxu3 %v781_v19  ;;  %224 = vmatpush.msrb.mxu1 %v691_v3 }
  0x13   :  { %572 = vmatmul.msk.f32.gmra.mxu0 %vm44_vm1, %v33_v15 }
  0x14   :  { %278 = vmatpush.msrb.mxu3 %v691_v3  ;;  %225 = vmatpush.msrb.mxu1 %v703_v5 }
  0x16   :  { %279 = vmatpush.msrb.mxu3 %v703_v5  ;;  %226 = vmatpush.msrb.mxu1 %v713_v7 }
  0x18   :  { %280 = vmatpush.msrb.mxu3 %v713_v7  ;;  %227 = vmatpush.msrb.mxu1 %v730_v10 }
  0x1a   :  { %281 = vmatpush.msrb.mxu3 %v730_v10 }
  0x1b   :  { %573 = vmatmul.msk.f32.gmra.mxu0 %vm44_vm1, %v34_v29 }
  0x23   :  { %574 = vmatmul.msk.f32.gmra.mxu0 %vm44_vm1, %v35_v39 }
  0x2b   :  { %575 = vmatmul.msk.f32.gmra.mxu0 %vm44_vm1, %v36_v48 }
  0x33   :  { %576 = vmatmul.msk.f32.gmra.mxu0 %vm44_vm1, %v37_v57 }
  0x3b   :  { %577 = vmatmul.msk.f32.gmra.mxu0 %vm44_vm1, %v38_v1 }
  0x80   :  { %v90_v12 = vpop.f32.mrf.mxu0 }
  0x81   :  { %v91_v13 = vadd.f32 %v746_v11, %v90_v12 }
  0x83   :  { %598 = vtanh.f32 %v91_v13 }
  0x88   :  { %v93_v20 = vpop.f32.mrf.mxu0 }
  0x89   :  { %v599_v14 = vpop.eup %598  ;;  %v94_v21 = vadd.f32 %v746_v11, %v93_v20 }
  0x8a   :  { %578 = vmatmul.msk.f32.vlgmr.msra.gmra.mxu1 %vm128_vm2, %v599_v14  ;;  %579 = vmatmul.msk.f32.vlgmr.msra.gmra.mxu2 %vm128_vm2, %v599_v14 }
  0x8b   :  { %302 = vmatpush.msra.mxu2 %v686_v2  ;;  %328 = vmatpush.msra.mxu1 %v762_v16 }
  0x8d   :  { %303 = vmatpush.msra.mxu2 %v698_v4  ;;  %329 = vmatpush.msra.mxu1 %v767_v17 }
  0x8f   :  { %304 = vmatpush.msra.mxu2 %v708_v6  ;;  %330 = vmatpush.msra.mxu1 %v774_v18 }
  0x90   :  { %v96_v32 = vpop.f32.mrf.mxu0 }
  0x91   :  { %305 = vmatpush.msra.mxu2 %v725_v9  ;;  %331 = vmatpush.msra.mxu1 %v781_v19  ;;  %v97_v33 = vadd.f32 %v746_v11, %v96_v32 }
  0x93   :  { %332 = vmatpush.msra.mxu1 %v691_v3 }
  0x95   :  { %333 = vmatpush.msra.mxu1 %v703_v5 }
  0x97   :  { %334 = vmatpush.msra.mxu1 %v713_v7 }
  0x98   :  { %v99_v41 = vpop.f32.mrf.mxu0 }
  0x99   :  { %335 = vmatpush.msra.mxu1 %v730_v10  ;;  %v100_v42 = vadd.f32 %v746_v11, %v99_v41 }
  0xa0   :  { %v102_v49 = vpop.f32.mrf.mxu0 }
  0xa1   :  { %v103_v50 = vadd.f32 %v746_v11, %v102_v49 }
  0xa8   :  { %v105_v58 = vpop.f32.mrf.mxu0 }
  0xa9   :  { %v106_v59 = vadd.f32 %v746_v11, %v105_v58 }
 0x107   :  { %v149_v22 = vpop.f32.mrf.mxu1 }
 0x108   :  { %v152_v23 = vadd.f32 %v149_v22, %v94_v21 }
 0x10a   :  { %600 = vtanh.f32 %v152_v23 }
 0x10d   :  { %v174_v25 = vpop.f32.mrf.mxu2 }
 0x10e   :  { %v175_v26 = vadd.f32 %v801_v24, %v174_v25 }
 0x110   :  { %v601_v27 = vpop.eup %600  ;;  %602 = vtanh.f32 %v175_v26 }
 0x111   :  { %580 = vmatmul.msk.f32.vlgmr.msra.gmra.mxu3 %vm128_vm2, %v601_v27 }
 0x112   :  { %382 = vmatpush.msra.mxu3 %v762_v16 }
 0x114   :  { %383 = vmatpush.msra.mxu3 %v767_v17 }
 0x116   :  { %v603_v28 = vpop.eup %602  ;;  %384 = vmatpush.msra.mxu3 %v774_v18 }
 0x117   :  { %204 = vrot.lane.b32.xlu0 %v603_v28, %s630_s5 }
 0x118   :  { %385 = vmatpush.msra.mxu3 %v781_v19 }
 0x11a   :  { %386 = vmatpush.msra.mxu3 %v691_v3 }
 0x11c   :  { %387 = vmatpush.msra.mxu3 %v703_v5 }
 0x11e   :  { %388 = vmatpush.msra.mxu3 %v713_v7 }
 0x120   :  { %389 = vmatpush.msra.mxu3 %v730_v10 }
 0x189   :  { %v205_v30 = vpop.permute.xlu0 %204 }
 0x18a   :  { %v207_v31 = vsel %vm128_vm2, %v601_v27, %v205_v30 }
 0x18b   :  { %581 = vmatmul.msk.f32.vlgmr.msrb.gmra.mxu1 %vm208_vm3, %v207_v31 }
 0x18c   :  { %436 = vmatpush.msrb.mxu1 %v762_v16 }
 0x18e   :  { %437 = vmatpush.msrb.mxu1 %v767_v17 }
 0x190   :  { %438 = vmatpush.msrb.mxu1 %v774_v18 }
 0x192   :  { %439 = vmatpush.msrb.mxu1 %v781_v19 }
 0x194   :  { %v198_v34 = vpop.f32.mrf.mxu3  ;;  %440 = vmatpush.msrb.mxu1 %v691_v3 }
 0x195   :  { %v201_v35 = vadd.f32 %v198_v34, %v97_v33  ;;  %v535_v34 = vld [vmem:[%s939_s6 + $0x18] sm:$0xff] }
 0x196   :  { %441 = vmatpush.msrb.mxu1 %v703_v5 }
 0x197   :  { %604 = vtanh.f32 %v201_v35  ;;  %v534_v35 = vld [vmem:[%s939_s6 + $0x10] sm:$0xff] }
 0x198   :  { %442 = vmatpush.msrb.mxu1 %v713_v7 }
 0x19a   :  { %443 = vmatpush.msrb.mxu1 %v730_v10 }
 0x19d   :  { %v605_v36 = vpop.eup %604 }
 0x19e   :  { %582 = vmatmul.msk.f32.vlgmr.msrb.gmra.mxu2 %vm128_vm2, %v605_v36 }
 0x19f   :  { %356 = vmatpush.msrb.mxu2 %v686_v2 }
 0x1a1   :  { %357 = vmatpush.msrb.mxu2 %v698_v4 }
 0x1a3   :  { %358 = vmatpush.msrb.mxu2 %v708_v6 }
 0x1a5   :  { %359 = vmatpush.msrb.mxu2 %v725_v9 }
 0x208   :  { %v229_v37 = vpop.f32.mrf.mxu1 }
 0x209   :  { %v230_v38 = vadd.f32 %v801_v24, %v229_v37  ;;  %v13_v37 = vstv %s940_s7 }
 0x20a   :  { %14 = vst [vmem:[#allocation2] sm:$0x1] %v13_v37 }
 0x20b   :  { %606 = vtanh.f32 %v230_v38 }
 0x211   :  { %v607_v40 = vpop.eup %606  ;;  %v597_v41 = vld [vmem:[#allocation2] ss:$0 sm:$0xff] }
 0x212   :  { %259 = vrot.lane.b32.xlu0 %v607_v40, %s630_s5 }
 0x221   :  { %v253_v43 = vpop.f32.mrf.mxu2 }
 0x222   :  { %v256_v44 = vadd.f32 %v253_v43, %v100_v42 }
 0x224   :  { %608 = vtanh.f32 %v256_v44 }
 0x22a   :  { %v609_v45 = vpop.eup %608 }
 0x22b   :  { %584 = vmatmul.msk.f32.vlgmr.msra.gmra.mxu2 %vm128_vm2, %v609_v45 }
 0x22c   :  { %410 = vmatpush.msra.mxu2 %v686_v2 }
 0x22e   :  { %411 = vmatpush.msra.mxu2 %v698_v4 }
 0x230   :  { %412 = vmatpush.msra.mxu2 %v708_v6 }
 0x232   :  { %413 = vmatpush.msra.mxu2 %v725_v9 }
 0x284   :  { %v260_v46 = vpop.permute.xlu0 %259 }
 0x285   :  { %v262_v47 = vsel %vm128_vm2, %v605_v36, %v260_v46  ;;  %v532_v36 = vld [vmem:[%s939_s6] sm:$0xff] }
 0x286   :  { %583 = vmatmul.msk.f32.vlgmr.msrb.gmra.mxu3 %vm208_vm3, %v262_v47 }
 0x287   :  { %490 = vmatpush.msrb.mxu3 %v762_v16 }
 0x289   :  { %491 = vmatpush.msrb.mxu3 %v767_v17 }
 0x28b   :  { %492 = vmatpush.msrb.mxu3 %v774_v18 }
 0x28d   :  { %493 = vmatpush.msrb.mxu3 %v781_v19 }
 0x28f   :  { %494 = vmatpush.msrb.mxu3 %v691_v3 }
 0x291   :  { %495 = vmatpush.msrb.mxu3 %v703_v5 }
 0x293   :  { %496 = vmatpush.msrb.mxu3 %v713_v7 }
 0x295   :  { %497 = vmatpush.msrb.mxu3 %v730_v10 }
 0x2ae   :  { %v307_v51 = vpop.f32.mrf.mxu2 }
 0x2af   :  { %v310_v52 = vadd.f32 %v307_v51, %v103_v50 }
 0x2b1   :  { %610 = vtanh.f32 %v310_v52 }
 0x2b7   :  { %v611_v53 = vpop.eup %610 }
 0x2b8   :  { %586 = vmatmul.msk.f32.vlgmr.msrb.gmra.mxu2 %vm128_vm2, %v611_v53 }
 0x2b9   :  { %464 = vmatpush.msrb.mxu2 %v686_v2  ;;  %v108_v2 = vpop.f32.mrf.mxu0 }
 0x2bb   :  { %465 = vmatpush.msrb.mxu2 %v698_v4 }
 0x2bd   :  { %466 = vmatpush.msrb.mxu2 %v708_v6 }
 0x2bf   :  { %467 = vmatpush.msrb.mxu2 %v725_v9 }
 0x2c1   :  { %v111_v27 = vpop.f32.mrf.mxu0 }
 0x2c2   :  { %v112_v28 = vadd.f32 %v746_v11, %v111_v27 }
 0x309   :  { %v283_v54 = vpop.f32.mrf.mxu3 }
 0x30a   :  { %v284_v55 = vadd.f32 %v801_v24, %v283_v54 }
 0x30c   :  { %612 = vtanh.f32 %v284_v55 }
 0x312   :  { %v613_v56 = vpop.eup %612 }
 0x313   :  { %313 = vrot.lane.b32.xlu1 %v613_v56, %s630_s5 }
 0x33b   :  { %v361_v60 = vpop.f32.mrf.mxu2 }
 0x33c   :  { %v364_v61 = vadd.f32 %v361_v60, %v106_v59 }
 0x33e   :  { %614 = vtanh.f32 %v364_v61 }
 0x344   :  { %v615_v62 = vpop.eup %614 }
 0x345   :  { %588 = vmatmul.msk.f32.vlgmr.msra.gmra.mxu2 %vm128_vm2, %v615_v62 }
 0x346   :  { %519 = vmatpush.msra.mxu2 %v762_v16 }
 0x348   :  { %520 = vmatpush.msra.mxu2 %v767_v17 }
 0x34a   :  { %521 = vmatpush.msra.mxu2 %v774_v18 }
 0x34c   :  { %522 = vmatpush.msra.mxu2 %v781_v19 }
 0x34e   :  { %523 = vmatpush.msra.mxu2 %v691_v3  ;;  %v109_v3 = vadd.f32 %v746_v11, %v108_v2  ;;  %v533_v11 = vld [vmem:[%s939_s6 + $0x8] sm:$0xff] }
 0x350   :  { %524 = vmatpush.msra.mxu2 %v703_v5 }
 0x352   :  { %525 = vmatpush.msra.mxu2 %v713_v7 }
 0x354   :  { %526 = vmatpush.msra.mxu2 %v730_v10 }
 0x385   :  { %v314_v63 = vpop.permute.xlu1 %313 }
 0x386   :  { %v316_v0 = vsel %vm128_vm2, %v609_v45, %v314_v63 }
 0x387   :  { %585 = vmatmul.msk.f32.vlgmr.msra.gmra.mxu1 %vm208_vm3, %v316_v0 }
 0x388   :  { %555 = vmatpush.msra.mxu1 %v535_v34 }
 0x38a   :  { %556 = vmatpush.msra.mxu1 %v534_v35 }
 0x38c   :  { %557 = vmatpush.msra.mxu1 %v533_v11 }
 0x38e   :  { %558 = vmatpush.msra.mxu1 %v532_v36 }
 0x3c8   :  { %v415_v4 = vpop.f32.mrf.mxu2 }
 0x3c9   :  { %v418_v5 = vadd.f32 %v415_v4, %v109_v3 }
 0x3cb   :  { %616 = vtanh.f32 %v418_v5 }
 0x3d1   :  { %v617_v6 = vpop.eup %616 }
 0x3d2   :  { %590 = vmatmul.msk.f32.vlgmr.msrb.gmra.mxu2 %vm128_vm2, %v617_v6 }
 0x404   :  { %v337_v7 = vpop.f32.mrf.mxu1 }
 0x405   :  { %v338_v8 = vadd.f32 %v801_v24, %v337_v7 }
 0x407   :  { %618 = vtanh.f32 %v338_v8 }
 0x40d   :  { %v619_v9 = vpop.eup %618 }
 0x40e   :  { %367 = vrot.lane.b32.xlu1 %v619_v9, %s630_s5 }
 0x455   :  { %v469_v29 = vpop.f32.mrf.mxu2 }
 0x456   :  { %v472_v30 = vadd.f32 %v469_v29, %v112_v28 }
 0x480   :  { %v368_v10 = vpop.permute.xlu1 %367 }
 0x481   :  { %v370_v12 = vsel %vm128_vm2, %v611_v53, %v368_v10 }
 0x482   :  { %587 = vmatmul.msk.f32.vlgmr.msra.gmra.mxu3 %vm208_vm3, %v370_v12 }
 0x505   :  { %v391_v13 = vpop.f32.mrf.mxu3 }
 0x506   :  { %v392_v14 = vadd.f32 %v801_v24, %v391_v13 }
 0x508   :  { %620 = vtanh.f32 %v392_v14 }
 0x50e   :  { %v621_v15 = vpop.eup %620 }
 0x50f   :  { %421 = vrot.lane.b32.xlu2 %v621_v15, %s630_s5 }
 0x569   :  { %v422_v16 = vpop.permute.xlu2 %421 }
 0x56a   :  { %v424_v17 = vsel %vm128_vm2, %v615_v62, %v422_v16 }
 0x56b   :  { %589 = vmatmul.msk.f32.vlgmr.msrb.gmra.mxu1 %vm208_vm3, %v424_v17 }
 0x5e8   :  { %v445_v18 = vpop.f32.mrf.mxu1 }
 0x5e9   :  { %v446_v19 = vadd.f32 %v801_v24, %v445_v18 }
 0x5eb   :  { %622 = vtanh.f32 %v446_v19 }
 0x5f1   :  { %v623_v20 = vpop.eup %622 }
 0x5f2   :  { %475 = vrot.lane.b32.xlu2 %v623_v20, %s630_s5 }
 0x64c   :  { %v476_v21 = vpop.permute.xlu2 %475 }
 0x64d   :  { %v478_v22 = vsel %vm128_vm2, %v617_v6, %v476_v21 }
 0x64e   :  { %591 = vmatmul.msk.f32.vlgmr.msrb.gmra.mxu3 %vm208_vm3, %v478_v22 }
 0x6d1   :  { %v499_v23 = vpop.f32.mrf.mxu3 }
 0x6d2   :  { %v500_v25 = vadd.f32 %v801_v24, %v499_v23 }
 0x6d4   :  { %624 = vtanh.f32 %v500_v25 }
 0x6d5   :  { %626 = vtanh.f32 %v472_v30 }
 0x6da   :  { %v625_v26 = vpop.eup %624 }
 0x6db   :  { %504 = vrot.lane.b32.xlu0 %v625_v26, %s630_s5  ;;  %v627_v31 = vpop.eup %626 }
 0x74d   :  { %v505_v32 = vpop.permute.xlu0 %504 }
 0x74e   :  { %v507_v33 = vsel %vm128_vm2, %v627_v31, %v505_v32 }
 0x74f   :  { %592 = vmatmul.msk.f32.vlgmr.msra.gmra.mxu2 %vm208_vm3, %v507_v33 }
 0x7d2   :  { %v528_v38 = vpop.f32.mrf.mxu2 }
 0x7d3   :  { %v529_v39 = vadd.f32 %v801_v24, %v528_v38 }
 0x7d5   :  { %628 = vtanh.f32 %v529_v39 }
 0x7db   :  { %v629_v40 = vpop.eup %628 }
 0x7dc   :  { %593 = vmatmul.msk.f32.vlgmr.msra.gmra.mxu1 %vm128_vm2, %v629_v40 }
 0x859   :  { %v560_v42 = vpop.f32.mrf.mxu1 }
 0x85a   :  { %v561_v43 = vadd.f32 %v597_v41, %v560_v42 }
 0x85c   :  { %564 = vst.msk [vmem:[%s941_s8] sm:$0xff] %vm563_vm4, %v561_v43 }

</bundles_post_ra>
